<compile_context>
chip_gen: v7x
topology: tpu7x:2x2x1
jax: 0.10.0
libtpu: 0.0.40
codegen_flags: <defaults>
</compile_context>

<pallas_src>
import jax
import jax.numpy as jnp
from jax.experimental import pallas as pl
from jax.experimental.pallas import tpu as pltpu


def _convnet1_kernel(x_ref, w1_ref, b1_ref, w2_ref, b2_ref, o_ref):
    # x_ref : (bn, Cin, tr, LW)  VMEM  pixel slab, one plane per (image, ch)
    # w1_ref: (Cmid, Cin)        SMEM  conv1 weight
    # b1_ref: (Cmid,)            SMEM  conv1 bias
    # w2_ref: (Cmid,)            SMEM  conv2 weight
    # b2_ref: (1,)               SMEM  conv2 bias
    # o_ref : (bn, tr, LW)       VMEM  lane-dense output slab
    bn, cin, tr, lw = x_ref.shape
    cmid = w1_ref.shape[0]

    # Row chunk: ~8 vregs of h / y live at a time, so large tr tiles never
    # spill whole-tile intermediates.  Chunk starts stay sublane aligned
    # (cap is a multiple of 8); a ragged tail chunk is handled statically.
    cap = max(8, 8192 // lw)

    for n in range(bn):
        for r0 in range(0, tr, cap):
            cs = min(cap, tr - r0)
            rows = slice(r0, r0 + cs)
            # y = b2 + sum_c w2[c] * relu(b1[c] + sum_k w1[c,k] * x_k)
            y = jnp.full((cs, lw), b2_ref[0], jnp.float32)
            for c in range(cmid):
                h = jnp.full((cs, lw), b1_ref[c], jnp.float32)
                for k in range(cin):
                    h = h + w1_ref[c, k] * x_ref[n, k, rows, :]
                y = y + w2_ref[c] * jnp.maximum(h, 0.0)
            o_ref[n, rows, :] = y.astype(o_ref.dtype)


def _pick_tiling(N, Cin, R, LW):
    """Choose (batch-per-block, pixel-rows-per-block)."""
    row_in = Cin * LW * 4            # input bytes per pixel row
    row_io = (Cin + 1) * LW * 4      # input + output bytes per pixel row

    # Tiny problems: fold the whole batch into a single grid step (per-step
    # overhead ~0.35us would otherwise dominate).
    if N * R * row_io <= (256 << 10):
        return N, R

    # Target ~1 MiB of input per block (measured mem-bound sweet spot), tr a
    # multiple of 8, and double-buffered in+out <= 8 MiB so it stays well
    # under scoped-VMEM defaults (16 MiB v5e, 32 MiB v6e/v7x).
    tr = min((1 << 20) // row_in, (8 << 20) // (2 * row_io), 512)
    tr = max(8, (tr // 8) * 8)

    if tr >= R:
        tr = R                        # full row extent: never a partial tile
    else:
        # Prefer a multiple-of-8 divisor of R so every row tile is full-size
        # (unmasked stores, full DMAs); accept it if within 2x of target.
        for cand in range(tr, 7, -8):
            if R % cand == 0:
                if 2 * cand >= tr:
                    tr = cand
                break

    # v7x megacore: keep >= 2 parallel grid steps when there's only one image.
    if N == 1 and tr == R and R >= 16:
        half = ((((R + 1) // 2) + 7) // 8) * 8
        if 8 <= half < R:
            tr = half
    return 1, tr


def convnet1_forward(x_nchw, w1, b1, w2, b2):
    """Forward pass of convnet1 (conv1x1 -> ReLU -> conv1x1).

    x_nchw: (N, Cin, H, W) float32
    w1    : (Cmid, Cin, 1, 1)   PyTorch Conv2d weight layout
    b1    : (Cmid,)
    w2    : (1, Cmid, 1, 1)
    b2    : (1,)
    returns (N, 1, H, W)
    """
    N, Cin, H, W = x_nchw.shape
    Cmid = w1.shape[0]
    P = H * W

    # Lane width: widest multiple of 128 that divides P while keeping the row
    # dim a multiple of 8 (dense sublanes, fewer/larger stores and DMAs).
    LW = 128
    for cand in (1024, 512, 256):
        if P % (8 * cand) == 0:
            LW = cand
            break
    R = pl.cdiv(P, LW)
    P_pad = R * LW

    # Free reshape: channels stay major, pixels become (rows, LW) slabs.
    x3 = x_nchw.reshape(N, Cin, P)
    if P_pad != P:
        # TODO(synk): rare fallback (H*W not a multiple of 128) pays an HBM
        # pad copy + output slice; an in-kernel masked lane tail would avoid it.
        x3 = jnp.pad(x3, ((0, 0), (0, 0), (0, P_pad - P)))
    x4 = x3.reshape(N, Cin, R, LW)

    # 1x1 conv weights as small scalar tables (live in SMEM).
    w1_mat = w1.reshape(Cmid, Cin)
    b1_vec = b1.reshape(Cmid)
    w2_vec = w2.reshape(Cmid)
    b2_vec = b2.reshape(1)

    bn, tr = _pick_tiling(N, Cin, R, LW)
    grid = (pl.cdiv(N, bn), pl.cdiv(R, tr))

    smem_spec = pl.BlockSpec(memory_space=pltpu.MemorySpace.SMEM)

    out4 = pl.pallas_call(
        _convnet1_kernel,
        out_shape=jax.ShapeDtypeStruct((N, 1, R, LW), x_nchw.dtype),
        grid_spec=pltpu.PrefetchScalarGridSpec(
            num_scalar_prefetch=0,
            grid=grid,
            in_specs=[
                # (bn images, all Cin, tr pixel rows, LW lanes)
                pl.BlockSpec((bn, Cin, tr, LW), lambda n, r: (n, 0, r, 0)),
                smem_spec,  # w1
                smem_spec,  # b1
                smem_spec,  # w2
                smem_spec,  # b2
            ],
            out_specs=pl.BlockSpec((bn, None, tr, LW),
                                   lambda n, r: (n, 0, r, 0)),
        ),
        compiler_params=pltpu.CompilerParams(
            dimension_semantics=("parallel", "parallel")),
    )(x4, w1_mat, b1_vec, w2_vec, b2_vec)

    # Free reshapes back to NCHW; slice drops lane padding if any.
    out = out4.reshape(N, 1, P_pad)[:, :, :P].reshape(N, 1, H, W)
    return out


def _reference_forward(x_nchw, w1, b1, w2, b2):
    """Pure-JAX reference of the PyTorch forward (1x1 convs as einsums)."""
    h = jnp.einsum("nchw,oc->nohw", x_nchw, w1.reshape(w1.shape[0], w1.shape[1]))
    h = h + b1[None, :, None, None]
    h = jnp.maximum(h, 0.0)
    y = jnp.einsum("nchw,oc->nohw", h, w2.reshape(w2.shape[0], w2.shape[1]))
    y = y + b2[None, :, None, None]
    return y


if __name__ == "__main__":
    in_ch, n_channels = 3, 8

    key = jax.random.PRNGKey(0)
    k1, kb1, k2, kb2, kx = jax.random.split(key, 5)

    # Deterministic parameters (shapes match nn.Conv2d in __init__).
    w1 = jax.random.normal(k1, (n_channels, in_ch, 1, 1), dtype=jnp.float32) * 0.1
    b1 = jax.random.normal(kb1, (n_channels,), dtype=jnp.float32) * 0.1
    w2 = jax.random.normal(k2, (1, n_channels, 1, 1), dtype=jnp.float32) * 0.1
    b2 = jax.random.normal(kb2, (1,), dtype=jnp.float32) * 0.1

    # Shapes exercise: tiny single-step path, lane-widened tiled path, and
    # the pad / ragged-chunk path.
    test_shapes = [
        (2, in_ch, 16, 16),     # tiny: whole batch in one grid step
        (4, in_ch, 128, 128),   # LW=1024 widened, chunked, grid over batch
        (2, in_ch, 120, 120),   # H*W % 128 != 0 fallback + ragged row chunk
    ]

    for shape in test_shapes:
        kx, sub = jax.random.split(kx)
        x = jax.random.normal(sub, shape, dtype=jnp.float32)

        out = convnet1_forward(x, w1, b1, w2, b2)
        out = jax.block_until_ready(out)

        ref = _reference_forward(x, w1, b1, w2, b2)
        N, _, H, W = shape
        assert out.shape == (N, 1, H, W), (shape, out.shape)
        assert jnp.allclose(out, ref, atol=1e-5, rtol=1e-5), f"mismatch @ {shape}"

    print("KERNEL_OK")
</pallas_src>

<mosaic_0001>
module attributes {stable_mosaic.version = 11 : i64} {
  func.func @_convnet1_kernel(%arg0: i32, %arg1: i32, %arg2: memref<2x3x2x128xf32, #tpu.memory_space<vmem>>, %arg3: memref<8x3xf32, #tpu.memory_space<smem>>, %arg4: memref<8xf32, #tpu.memory_space<smem>>, %arg5: memref<8xf32, #tpu.memory_space<smem>>, %arg6: memref<1xf32, #tpu.memory_space<smem>>, %arg7: memref<2x1x2x128xf32, #tpu.memory_space<vmem>>) attributes {dimension_semantics = [#tpu.dimension_semantics<parallel>, #tpu.dimension_semantics<parallel>], iteration_bounds = array<i64: 1, 1>, scalar_prefetch = 0 : i64, scratch_operands = 0 : i64, tpu.core_type = #tpu.core_type<tc>, window_params = [{transform_indices = @transform_0, window_bounds = array<i64: 2, 3, 2, 128>}, {transform_indices = @transform_1, window_bounds = array<i64: 8, 3>}, {transform_indices = @transform_2, window_bounds = array<i64: 8>}, {transform_indices = @transform_3, window_bounds = array<i64: 8>}, {transform_indices = @transform_4, window_bounds = array<i64: 1>}, {transform_indices = @transform_5, window_bounds = array<i64: 2, 1, 2, 128>}]} {
    %c0 = arith.constant 0 : index
    %0 = memref.load %arg6[%c0] : memref<1xf32, #tpu.memory_space<smem>>
    %1 = vector.broadcast %0 : f32 to vector<2x128xf32>
    %c0_0 = arith.constant 0 : index
    %2 = memref.load %arg4[%c0_0] : memref<8xf32, #tpu.memory_space<smem>>
    %3 = vector.broadcast %2 : f32 to vector<2x128xf32>
    %c0_1 = arith.constant 0 : index
    %c0_2 = arith.constant 0 : index
    %4 = memref.load %arg3[%c0_1, %c0_2] : memref<8x3xf32, #tpu.memory_space<smem>>
    %c0_3 = arith.constant 0 : index
    %c0_4 = arith.constant 0 : index
    %c0_5 = arith.constant 0 : index
    %c0_6 = arith.constant 0 : index
    %5 = vector.load %arg2[%c0_3, %c0_4, %c0_5, %c0_6] : memref<2x3x2x128xf32, #tpu.memory_space<vmem>>, vector<1x1x2x128xf32>
    %6 = vector.shape_cast %5 : vector<1x1x2x128xf32> to vector<2x128xf32>
    %7 = vector.broadcast %4 : f32 to vector<2x128xf32>
    %8 = arith.mulf %7, %6 : vector<2x128xf32>
    %9 = arith.addf %3, %8 : vector<2x128xf32>
    %c0_7 = arith.constant 0 : index
    %c1 = arith.constant 1 : index
    %10 = memref.load %arg3[%c0_7, %c1] : memref<8x3xf32, #tpu.memory_space<smem>>
    %c0_8 = arith.constant 0 : index
    %c1_9 = arith.constant 1 : index
    %c0_10 = arith.constant 0 : index
    %c0_11 = arith.constant 0 : index
    %11 = vector.load %arg2[%c0_8, %c1_9, %c0_10, %c0_11] : memref<2x3x2x128xf32, #tpu.memory_space<vmem>>, vector<1x1x2x128xf32>
    %12 = vector.shape_cast %11 : vector<1x1x2x128xf32> to vector<2x128xf32>
    %13 = vector.broadcast %10 : f32 to vector<2x128xf32>
    %14 = arith.mulf %13, %12 : vector<2x128xf32>
    %15 = arith.addf %9, %14 : vector<2x128xf32>
    %c0_12 = arith.constant 0 : index
    %c2 = arith.constant 2 : index
    %16 = memref.load %arg3[%c0_12, %c2] : memref<8x3xf32, #tpu.memory_space<smem>>
    %c0_13 = arith.constant 0 : index
    %c2_14 = arith.constant 2 : index
    %c0_15 = arith.constant 0 : index
    %c0_16 = arith.constant 0 : index
    %17 = vector.load %arg2[%c0_13, %c2_14, %c0_15, %c0_16] : memref<2x3x2x128xf32, #tpu.memory_space<vmem>>, vector<1x1x2x128xf32>
    %18 = vector.shape_cast %17 : vector<1x1x2x128xf32> to vector<2x128xf32>
    %19 = vector.broadcast %16 : f32 to vector<2x128xf32>
    %20 = arith.mulf %19, %18 : vector<2x128xf32>
    %21 = arith.addf %15, %20 : vector<2x128xf32>
    %c0_17 = arith.constant 0 : index
    %22 = memref.load %arg5[%c0_17] : memref<8xf32, #tpu.memory_space<smem>>
    %cst = arith.constant 0.000000e+00 : f32
    %23 = vector.broadcast %cst : f32 to vector<2x128xf32>
    %24 = arith.maximumf %21, %23 : vector<2x128xf32>
    %25 = vector.broadcast %22 : f32 to vector<2x128xf32>
    %26 = arith.mulf %25, %24 : vector<2x128xf32>
    %27 = arith.addf %1, %26 : vector<2x128xf32>
    %c1_18 = arith.constant 1 : index
    %28 = memref.load %arg4[%c1_18] : memref<8xf32, #tpu.memory_space<smem>>
    %29 = vector.broadcast %28 : f32 to vector<2x128xf32>
    %c1_19 = arith.constant 1 : index
    %c0_20 = arith.constant 0 : index
    %30 = memref.load %arg3[%c1_19, %c0_20] : memref<8x3xf32, #tpu.memory_space<smem>>
    %c0_21 = arith.constant 0 : index
    %c0_22 = arith.constant 0 : index
    %c0_23 = arith.constant 0 : index
    %c0_24 = arith.constant 0 : index
    %31 = vector.load %arg2[%c0_21, %c0_22, %c0_23, %c0_24] : memref<2x3x2x128xf32, #tpu.memory_space<vmem>>, vector<1x1x2x128xf32>
    %32 = vector.shape_cast %31 : vector<1x1x2x128xf32> to vector<2x128xf32>
    %33 = vector.broadcast %30 : f32 to vector<2x128xf32>
    %34 = arith.mulf %33, %32 : vector<2x128xf32>
    %35 = arith.addf %29, %34 : vector<2x128xf32>
    %c1_25 = arith.constant 1 : index
    %c1_26 = arith.constant 1 : index
    %36 = memref.load %arg3[%c1_25, %c1_26] : memref<8x3xf32, #tpu.memory_space<smem>>
    %c0_27 = arith.constant 0 : index
    %c1_28 = arith.constant 1 : index
    %c0_29 = arith.constant 0 : index
    %c0_30 = arith.constant 0 : index
    %37 = vector.load %arg2[%c0_27, %c1_28, %c0_29, %c0_30] : memref<2x3x2x128xf32, #tpu.memory_space<vmem>>, vector<1x1x2x128xf32>
    %38 = vector.shape_cast %37 : vector<1x1x2x128xf32> to vector<2x128xf32>
    %39 = vector.broadcast %36 : f32 to vector<2x128xf32>
    %40 = arith.mulf %39, %38 : vector<2x128xf32>
    %41 = arith.addf %35, %40 : vector<2x128xf32>
    %c1_31 = arith.constant 1 : index
    %c2_32 = arith.constant 2 : index
    %42 = memref.load %arg3[%c1_31, %c2_32] : memref<8x3xf32, #tpu.memory_space<smem>>
    %c0_33 = arith.constant 0 : index
    %c2_34 = arith.constant 2 : index
    %c0_35 = arith.constant 0 : index
    %c0_36 = arith.constant 0 : index
    %43 = vector.load %arg2[%c0_33, %c2_34, %c0_35, %c0_36] : memref<2x3x2x128xf32, #tpu.memory_space<vmem>>, vector<1x1x2x128xf32>
    %44 = vector.shape_cast %43 : vector<1x1x2x128xf32> to vector<2x128xf32>
    %45 = vector.broadcast %42 : f32 to vector<2x128xf32>
    %46 = arith.mulf %45, %44 : vector<2x128xf32>
    %47 = arith.addf %41, %46 : vector<2x128xf32>
    %c1_37 = arith.constant 1 : index
    %48 = memref.load %arg5[%c1_37] : memref<8xf32, #tpu.memory_space<smem>>
    %cst_38 = arith.constant 0.000000e+00 : f32
    %49 = vector.broadcast %cst_38 : f32 to vector<2x128xf32>
    %50 = arith.maximumf %47, %49 : vector<2x128xf32>
    %51 = vector.broadcast %48 : f32 to vector<2x128xf32>
    %52 = arith.mulf %51, %50 : vector<2x128xf32>
    %53 = arith.addf %27, %52 : vector<2x128xf32>
    %c2_39 = arith.constant 2 : index
    %54 = memref.load %arg4[%c2_39] : memref<8xf32, #tpu.memory_space<smem>>
    %55 = vector.broadcast %54 : f32 to vector<2x128xf32>
    %c2_40 = arith.constant 2 : index
    %c0_41 = arith.constant 0 : index
    %56 = memref.load %arg3[%c2_40, %c0_41] : memref<8x3xf32, #tpu.memory_space<smem>>
    %c0_42 = arith.constant 0 : index
    %c0_43 = arith.constant 0 : index
    %c0_44 = arith.constant 0 : index
    %c0_45 = arith.constant 0 : index
    %57 = vector.load %arg2[%c0_42, %c0_43, %c0_44, %c0_45] : memref<2x3x2x128xf32, #tpu.memory_space<vmem>>, vector<1x1x2x128xf32>
    %58 = vector.shape_cast %57 : vector<1x1x2x128xf32> to vector<2x128xf32>
    %59 = vector.broadcast %56 : f32 to vector<2x128xf32>
    %60 = arith.mulf %59, %58 : vector<2x128xf32>
    %61 = arith.addf %55, %60 : vector<2x128xf32>
    %c2_46 = arith.constant 2 : index
    %c1_47 = arith.constant 1 : index
    %62 = memref.load %arg3[%c2_46, %c1_47] : memref<8x3xf32, #tpu.memory_space<smem>>
    %c0_48 = arith.constant 0 : index
    %c1_49 = arith.constant 1 : index
    %c0_50 = arith.constant 0 : index
    %c0_51 = arith.constant 0 : index
    %63 = vector.load %arg2[%c0_48, %c1_49, %c0_50, %c0_51] : memref<2x3x2x128xf32, #tpu.memory_space<vmem>>, vector<1x1x2x128xf32>
    %64 = vector.shape_cast %63 : vector<1x1x2x128xf32> to vector<2x128xf32>
    %65 = vector.broadcast %62 : f32 to vector<2x128xf32>
    %66 = arith.mulf %65, %64 : vector<2x128xf32>
    %67 = arith.addf %61, %66 : vector<2x128xf32>
    %c2_52 = arith.constant 2 : index
    %c2_53 = arith.constant 2 : index
    %68 = memref.load %arg3[%c2_52, %c2_53] : memref<8x3xf32, #tpu.memory_space<smem>>
    %c0_54 = arith.constant 0 : index
    %c2_55 = arith.constant 2 : index
    %c0_56 = arith.constant 0 : index
    %c0_57 = arith.constant 0 : index
    %69 = vector.load %arg2[%c0_54, %c2_55, %c0_56, %c0_57] : memref<2x3x2x128xf32, #tpu.memory_space<vmem>>, vector<1x1x2x128xf32>
    %70 = vector.shape_cast %69 : vector<1x1x2x128xf32> to vector<2x128xf32>
    %71 = vector.broadcast %68 : f32 to vector<2x128xf32>
    %72 = arith.mulf %71, %70 : vector<2x128xf32>
    %73 = arith.addf %67, %72 : vector<2x128xf32>
    %c2_58 = arith.constant 2 : index
    %74 = memref.load %arg5[%c2_58] : memref<8xf32, #tpu.memory_space<smem>>
    %cst_59 = arith.constant 0.000000e+00 : f32
    %75 = vector.broadcast %cst_59 : f32 to vector<2x128xf32>
    %76 = arith.maximumf %73, %75 : vector<2x128xf32>
    %77 = vector.broadcast %74 : f32 to vector<2x128xf32>
    %78 = arith.mulf %77, %76 : vector<2x128xf32>
    %79 = arith.addf %53, %78 : vector<2x128xf32>
    %c3 = arith.constant 3 : index
    %80 = memref.load %arg4[%c3] : memref<8xf32, #tpu.memory_space<smem>>
    %81 = vector.broadcast %80 : f32 to vector<2x128xf32>
    %c3_60 = arith.constant 3 : index
    %c0_61 = arith.constant 0 : index
    %82 = memref.load %arg3[%c3_60, %c0_61] : memref<8x3xf32, #tpu.memory_space<smem>>
    %c0_62 = arith.constant 0 : index
    %c0_63 = arith.constant 0 : index
    %c0_64 = arith.constant 0 : index
    %c0_65 = arith.constant 0 : index
    %83 = vector.load %arg2[%c0_62, %c0_63, %c0_64, %c0_65] : memref<2x3x2x128xf32, #tpu.memory_space<vmem>>, vector<1x1x2x128xf32>
    %84 = vector.shape_cast %83 : vector<1x1x2x128xf32> to vector<2x128xf32>
    %85 = vector.broadcast %82 : f32 to vector<2x128xf32>
    %86 = arith.mulf %85, %84 : vector<2x128xf32>
    %87 = arith.addf %81, %86 : vector<2x128xf32>
    %c3_66 = arith.constant 3 : index
    %c1_67 = arith.constant 1 : index
    %88 = memref.load %arg3[%c3_66, %c1_67] : memref<8x3xf32, #tpu.memory_space<smem>>
    %c0_68 = arith.constant 0 : index
    %c1_69 = arith.constant 1 : index
    %c0_70 = arith.constant 0 : index
    %c0_71 = arith.constant 0 : index
    %89 = vector.load %arg2[%c0_68, %c1_69, %c0_70, %c0_71] : memref<2x3x2x128xf32, #tpu.memory_space<vmem>>, vector<1x1x2x128xf32>
    %90 = vector.shape_cast %89 : vector<1x1x2x128xf32> to vector<2x128xf32>
    %91 = vector.broadcast %88 : f32 to vector<2x128xf32>
    %92 = arith.mulf %91, %90 : vector<2x128xf32>
    %93 = arith.addf %87, %92 : vector<2x128xf32>
    %c3_72 = arith.constant 3 : index
    %c2_73 = arith.constant 2 : index
    %94 = memref.load %arg3[%c3_72, %c2_73] : memref<8x3xf32, #tpu.memory_space<smem>>
    %c0_74 = arith.constant 0 : index
    %c2_75 = arith.constant 2 : index
    %c0_76 = arith.constant 0 : index
    %c0_77 = arith.constant 0 : index
    %95 = vector.load %arg2[%c0_74, %c2_75, %c0_76, %c0_77] : memref<2x3x2x128xf32, #tpu.memory_space<vmem>>, vector<1x1x2x128xf32>
    %96 = vector.shape_cast %95 : vector<1x1x2x128xf32> to vector<2x128xf32>
    %97 = vector.broadcast %94 : f32 to vector<2x128xf32>
    %98 = arith.mulf %97, %96 : vector<2x128xf32>
    %99 = arith.addf %93, %98 : vector<2x128xf32>
    %c3_78 = arith.constant 3 : index
    %100 = memref.load %arg5[%c3_78] : memref<8xf32, #tpu.memory_space<smem>>
    %cst_79 = arith.constant 0.000000e+00 : f32
    %101 = vector.broadcast %cst_79 : f32 to vector<2x128xf32>
    %102 = arith.maximumf %99, %101 : vector<2x128xf32>
    %103 = vector.broadcast %100 : f32 to vector<2x128xf32>
    %104 = arith.mulf %103, %102 : vector<2x128xf32>
    %105 = arith.addf %79, %104 : vector<2x128xf32>
    %c4 = arith.constant 4 : index
    %106 = memref.load %arg4[%c4] : memref<8xf32, #tpu.memory_space<smem>>
    %107 = vector.broadcast %106 : f32 to vector<2x128xf32>
    %c4_80 = arith.constant 4 : index
    %c0_81 = arith.constant 0 : index
    %108 = memref.load %arg3[%c4_80, %c0_81] : memref<8x3xf32, #tpu.memory_space<smem>>
    %c0_82 = arith.constant 0 : index
    %c0_83 = arith.constant 0 : index
    %c0_84 = arith.constant 0 : index
    %c0_85 = arith.constant 0 : index
    %109 = vector.load %arg2[%c0_82, %c0_83, %c0_84, %c0_85] : memref<2x3x2x128xf32, #tpu.memory_space<vmem>>, vector<1x1x2x128xf32>
    %110 = vector.shape_cast %109 : vector<1x1x2x128xf32> to vector<2x128xf32>
    %111 = vector.broadcast %108 : f32 to vector<2x128xf32>
    %112 = arith.mulf %111, %110 : vector<2x128xf32>
    %113 = arith.addf %107, %112 : vector<2x128xf32>
    %c4_86 = arith.constant 4 : index
    %c1_87 = arith.constant 1 : index
    %114 = memref.load %arg3[%c4_86, %c1_87] : memref<8x3xf32, #tpu.memory_space<smem>>
    %c0_88 = arith.constant 0 : index
    %c1_89 = arith.constant 1 : index
    %c0_90 = arith.constant 0 : index
    %c0_91 = arith.constant 0 : index
    %115 = vector.load %arg2[%c0_88, %c1_89, %c0_90, %c0_91] : memref<2x3x2x128xf32, #tpu.memory_space<vmem>>, vector<1x1x2x128xf32>
    %116 = vector.shape_cast %115 : vector<1x1x2x128xf32> to vector<2x128xf32>
    %117 = vector.broadcast %114 : f32 to vector<2x128xf32>
    %118 = arith.mulf %117, %116 : vector<2x128xf32>
    %119 = arith.addf %113, %118 : vector<2x128xf32>
    %c4_92 = arith.constant 4 : index
    %c2_93 = arith.constant 2 : index
    %120 = memref.load %arg3[%c4_92, %c2_93] : memref<8x3xf32, #tpu.memory_space<smem>>
    %c0_94 = arith.constant 0 : index
    %c2_95 = arith.constant 2 : index
    %c0_96 = arith.constant 0 : index
    %c0_97 = arith.constant 0 : index
    %121 = vector.load %arg2[%c0_94, %c2_95, %c0_96, %c0_97] : memref<2x3x2x128xf32, #tpu.memory_space<vmem>>, vector<1x1x2x128xf32>
    %122 = vector.shape_cast %121 : vector<1x1x2x128xf32> to vector<2x128xf32>
    %123 = vector.broadcast %120 : f32 to vector<2x128xf32>
    %124 = arith.mulf %123, %122 : vector<2x128xf32>
    %125 = arith.addf %119, %124 : vector<2x128xf32>
    %c4_98 = arith.constant 4 : index
    %126 = memref.load %arg5[%c4_98] : memref<8xf32, #tpu.memory_space<smem>>
    %cst_99 = arith.constant 0.000000e+00 : f32
    %127 = vector.broadcast %cst_99 : f32 to vector<2x128xf32>
    %128 = arith.maximumf %125, %127 : vector<2x128xf32>
    %129 = vector.broadcast %126 : f32 to vector<2x128xf32>
    %130 = arith.mulf %129, %128 : vector<2x128xf32>
    %131 = arith.addf %105, %130 : vector<2x128xf32>
    %c5 = arith.constant 5 : index
    %132 = memref.load %arg4[%c5] : memref<8xf32, #tpu.memory_space<smem>>
    %133 = vector.broadcast %132 : f32 to vector<2x128xf32>
    %c5_100 = arith.constant 5 : index
    %c0_101 = arith.constant 0 : index
    %134 = memref.load %arg3[%c5_100, %c0_101] : memref<8x3xf32, #tpu.memory_space<smem>>
    %c0_102 = arith.constant 0 : index
    %c0_103 = arith.constant 0 : index
    %c0_104 = arith.constant 0 : index
    %c0_105 = arith.constant 0 : index
    %135 = vector.load %arg2[%c0_102, %c0_103, %c0_104, %c0_105] : memref<2x3x2x128xf32, #tpu.memory_space<vmem>>, vector<1x1x2x128xf32>
    %136 = vector.shape_cast %135 : vector<1x1x2x128xf32> to vector<2x128xf32>
    %137 = vector.broadcast %134 : f32 to vector<2x128xf32>
    %138 = arith.mulf %137, %136 : vector<2x128xf32>
    %139 = arith.addf %133, %138 : vector<2x128xf32>
    %c5_106 = arith.constant 5 : index
    %c1_107 = arith.constant 1 : index
    %140 = memref.load %arg3[%c5_106, %c1_107] : memref<8x3xf32, #tpu.memory_space<smem>>
    %c0_108 = arith.constant 0 : index
    %c1_109 = arith.constant 1 : index
    %c0_110 = arith.constant 0 : index
    %c0_111 = arith.constant 0 : index
    %141 = vector.load %arg2[%c0_108, %c1_109, %c0_110, %c0_111] : memref<2x3x2x128xf32, #tpu.memory_space<vmem>>, vector<1x1x2x128xf32>
    %142 = vector.shape_cast %141 : vector<1x1x2x128xf32> to vector<2x128xf32>
    %143 = vector.broadcast %140 : f32 to vector<2x128xf32>
    %144 = arith.mulf %143, %142 : vector<2x128xf32>
    %145 = arith.addf %139, %144 : vector<2x128xf32>
    %c5_112 = arith.constant 5 : index
    %c2_113 = arith.constant 2 : index
    %146 = memref.load %arg3[%c5_112, %c2_113] : memref<8x3xf32, #tpu.memory_space<smem>>
    %c0_114 = arith.constant 0 : index
    %c2_115 = arith.constant 2 : index
    %c0_116 = arith.constant 0 : index
    %c0_117 = arith.constant 0 : index
    %147 = vector.load %arg2[%c0_114, %c2_115, %c0_116, %c0_117] : memref<2x3x2x128xf32, #tpu.memory_space<vmem>>, vector<1x1x2x128xf32>
    %148 = vector.shape_cast %147 : vector<1x1x2x128xf32> to vector<2x128xf32>
    %149 = vector.broadcast %146 : f32 to vector<2x128xf32>
    %150 = arith.mulf %149, %148 : vector<2x128xf32>
    %151 = arith.addf %145, %150 : vector<2x128xf32>
    %c5_118 = arith.constant 5 : index
    %152 = memref.load %arg5[%c5_118] : memref<8xf32, #tpu.memory_space<smem>>
    %cst_119 = arith.constant 0.000000e+00 : f32
    %153 = vector.broadcast %cst_119 : f32 to vector<2x128xf32>
    %154 = arith.maximumf %151, %153 : vector<2x128xf32>
    %155 = vector.broadcast %152 : f32 to vector<2x128xf32>
    %156 = arith.mulf %155, %154 : vector<2x128xf32>
    %157 = arith.addf %131, %156 : vector<2x128xf32>
    %c6 = arith.constant 6 : index
    %158 = memref.load %arg4[%c6] : memref<8xf32, #tpu.memory_space<smem>>
    %159 = vector.broadcast %158 : f32 to vector<2x128xf32>
    %c6_120 = arith.constant 6 : index
    %c0_121 = arith.constant 0 : index
    %160 = memref.load %arg3[%c6_120, %c0_121] : memref<8x3xf32, #tpu.memory_space<smem>>
    %c0_122 = arith.constant 0 : index
    %c0_123 = arith.constant 0 : index
    %c0_124 = arith.constant 0 : index
    %c0_125 = arith.constant 0 : index
    %161 = vector.load %arg2[%c0_122, %c0_123, %c0_124, %c0_125] : memref<2x3x2x128xf32, #tpu.memory_space<vmem>>, vector<1x1x2x128xf32>
    %162 = vector.shape_cast %161 : vector<1x1x2x128xf32> to vector<2x128xf32>
    %163 = vector.broadcast %160 : f32 to vector<2x128xf32>
    %164 = arith.mulf %163, %162 : vector<2x128xf32>
    %165 = arith.addf %159, %164 : vector<2x128xf32>
    %c6_126 = arith.constant 6 : index
    %c1_127 = arith.constant 1 : index
    %166 = memref.load %arg3[%c6_126, %c1_127] : memref<8x3xf32, #tpu.memory_space<smem>>
    %c0_128 = arith.constant 0 : index
    %c1_129 = arith.constant 1 : index
    %c0_130 = arith.constant 0 : index
    %c0_131 = arith.constant 0 : index
    %167 = vector.load %arg2[%c0_128, %c1_129, %c0_130, %c0_131] : memref<2x3x2x128xf32, #tpu.memory_space<vmem>>, vector<1x1x2x128xf32>
    %168 = vector.shape_cast %167 : vector<1x1x2x128xf32> to vector<2x128xf32>
    %169 = vector.broadcast %166 : f32 to vector<2x128xf32>
    %170 = arith.mulf %169, %168 : vector<2x128xf32>
    %171 = arith.addf %165, %170 : vector<2x128xf32>
    %c6_132 = arith.constant 6 : index
    %c2_133 = arith.constant 2 : index
    %172 = memref.load %arg3[%c6_132, %c2_133] : memref<8x3xf32, #tpu.memory_space<smem>>
    %c0_134 = arith.constant 0 : index
    %c2_135 = arith.constant 2 : index
    %c0_136 = arith.constant 0 : index
    %c0_137 = arith.constant 0 : index
    %173 = vector.load %arg2[%c0_134, %c2_135, %c0_136, %c0_137] : memref<2x3x2x128xf32, #tpu.memory_space<vmem>>, vector<1x1x2x128xf32>
    %174 = vector.shape_cast %173 : vector<1x1x2x128xf32> to vector<2x128xf32>
    %175 = vector.broadcast %172 : f32 to vector<2x128xf32>
    %176 = arith.mulf %175, %174 : vector<2x128xf32>
    %177 = arith.addf %171, %176 : vector<2x128xf32>
    %c6_138 = arith.constant 6 : index
    %178 = memref.load %arg5[%c6_138] : memref<8xf32, #tpu.memory_space<smem>>
    %cst_139 = arith.constant 0.000000e+00 : f32
    %179 = vector.broadcast %cst_139 : f32 to vector<2x128xf32>
    %180 = arith.maximumf %177, %179 : vector<2x128xf32>
    %181 = vector.broadcast %178 : f32 to vector<2x128xf32>
    %182 = arith.mulf %181, %180 : vector<2x128xf32>
    %183 = arith.addf %157, %182 : vector<2x128xf32>
    %c7 = arith.constant 7 : index
    %184 = memref.load %arg4[%c7] : memref<8xf32, #tpu.memory_space<smem>>
    %185 = vector.broadcast %184 : f32 to vector<2x128xf32>
    %c7_140 = arith.constant 7 : index
    %c0_141 = arith.constant 0 : index
    %186 = memref.load %arg3[%c7_140, %c0_141] : memref<8x3xf32, #tpu.memory_space<smem>>
    %c0_142 = arith.constant 0 : index
    %c0_143 = arith.constant 0 : index
    %c0_144 = arith.constant 0 : index
    %c0_145 = arith.constant 0 : index
    %187 = vector.load %arg2[%c0_142, %c0_143, %c0_144, %c0_145] : memref<2x3x2x128xf32, #tpu.memory_space<vmem>>, vector<1x1x2x128xf32>
    %188 = vector.shape_cast %187 : vector<1x1x2x128xf32> to vector<2x128xf32>
    %189 = vector.broadcast %186 : f32 to vector<2x128xf32>
    %190 = arith.mulf %189, %188 : vector<2x128xf32>
    %191 = arith.addf %185, %190 : vector<2x128xf32>
    %c7_146 = arith.constant 7 : index
    %c1_147 = arith.constant 1 : index
    %192 = memref.load %arg3[%c7_146, %c1_147] : memref<8x3xf32, #tpu.memory_space<smem>>
    %c0_148 = arith.constant 0 : index
    %c1_149 = arith.constant 1 : index
    %c0_150 = arith.constant 0 : index
    %c0_151 = arith.constant 0 : index
    %193 = vector.load %arg2[%c0_148, %c1_149, %c0_150, %c0_151] : memref<2x3x2x128xf32, #tpu.memory_space<vmem>>, vector<1x1x2x128xf32>
    %194 = vector.shape_cast %193 : vector<1x1x2x128xf32> to vector<2x128xf32>
    %195 = vector.broadcast %192 : f32 to vector<2x128xf32>
    %196 = arith.mulf %195, %194 : vector<2x128xf32>
    %197 = arith.addf %191, %196 : vector<2x128xf32>
    %c7_152 = arith.constant 7 : index
    %c2_153 = arith.constant 2 : index
    %198 = memref.load %arg3[%c7_152, %c2_153] : memref<8x3xf32, #tpu.memory_space<smem>>
    %c0_154 = arith.constant 0 : index
    %c2_155 = arith.constant 2 : index
    %c0_156 = arith.constant 0 : index
    %c0_157 = arith.constant 0 : index
    %199 = vector.load %arg2[%c0_154, %c2_155, %c0_156, %c0_157] : memref<2x3x2x128xf32, #tpu.memory_space<vmem>>, vector<1x1x2x128xf32>
    %200 = vector.shape_cast %199 : vector<1x1x2x128xf32> to vector<2x128xf32>
    %201 = vector.broadcast %198 : f32 to vector<2x128xf32>
    %202 = arith.mulf %201, %200 : vector<2x128xf32>
    %203 = arith.addf %197, %202 : vector<2x128xf32>
    %c7_158 = arith.constant 7 : index
    %204 = memref.load %arg5[%c7_158] : memref<8xf32, #tpu.memory_space<smem>>
    %cst_159 = arith.constant 0.000000e+00 : f32
    %205 = vector.broadcast %cst_159 : f32 to vector<2x128xf32>
    %206 = arith.maximumf %203, %205 : vector<2x128xf32>
    %207 = vector.broadcast %204 : f32 to vector<2x128xf32>
    %208 = arith.mulf %207, %206 : vector<2x128xf32>
    %209 = arith.addf %183, %208 : vector<2x128xf32>
    %c0_160 = arith.constant 0 : index
    %c0_161 = arith.constant 0 : index
    %c0_162 = arith.constant 0 : index
    %c0_163 = arith.constant 0 : index
    %210 = vector.load %arg7[%c0_160, %c0_161, %c0_162, %c0_163] : memref<2x1x2x128xf32, #tpu.memory_space<vmem>>, vector<1x1x2x128xf32>
    %211 = vector.shape_cast %210 : vector<1x1x2x128xf32> to vector<2x128xf32>
    %212 = vector.shape_cast %209 : vector<2x128xf32> to vector<1x1x2x128xf32>
    tpu.vector_store %arg7[%c0_160, %c0_161, %c0_162, %c0_163], %212 {strides = array<i32>} : memref<2x1x2x128xf32, #tpu.memory_space<vmem>>, vector<1x1x2x128xf32>,
    %c0_164 = arith.constant 0 : index
    %213 = memref.load %arg6[%c0_164] : memref<1xf32, #tpu.memory_space<smem>>
    %214 = vector.broadcast %213 : f32 to vector<2x128xf32>
    %c0_165 = arith.constant 0 : index
    %215 = memref.load %arg4[%c0_165] : memref<8xf32, #tpu.memory_space<smem>>
    %216 = vector.broadcast %215 : f32 to vector<2x128xf32>
    %c0_166 = arith.constant 0 : index
    %c0_167 = arith.constant 0 : index
    %217 = memref.load %arg3[%c0_166, %c0_167] : memref<8x3xf32, #tpu.memory_space<smem>>
    %c1_168 = arith.constant 1 : index
    %c0_169 = arith.constant 0 : index
    %c0_170 = arith.constant 0 : index
    %c0_171 = arith.constant 0 : index
    %218 = vector.load %arg2[%c1_168, %c0_169, %c0_170, %c0_171] : memref<2x3x2x128xf32, #tpu.memory_space<vmem>>, vector<1x1x2x128xf32>
    %219 = vector.shape_cast %218 : vector<1x1x2x128xf32> to vector<2x128xf32>
    %220 = vector.broadcast %217 : f32 to vector<2x128xf32>
    %221 = arith.mulf %220, %219 : vector<2x128xf32>
    %222 = arith.addf %216, %221 : vector<2x128xf32>
    %c0_172 = arith.constant 0 : index
    %c1_173 = arith.constant 1 : index
    %223 = memref.load %arg3[%c0_172, %c1_173] : memref<8x3xf32, #tpu.memory_space<smem>>
    %c1_174 = arith.constant 1 : index
    %c1_175 = arith.constant 1 : index
    %c0_176 = arith.constant 0 : index
    %c0_177 = arith.constant 0 : index
    %224 = vector.load %arg2[%c1_174, %c1_175, %c0_176, %c0_177] : memref<2x3x2x128xf32, #tpu.memory_space<vmem>>, vector<1x1x2x128xf32>
    %225 = vector.shape_cast %224 : vector<1x1x2x128xf32> to vector<2x128xf32>
    %226 = vector.broadcast %223 : f32 to vector<2x128xf32>
    %227 = arith.mulf %226, %225 : vector<2x128xf32>
    %228 = arith.addf %222, %227 : vector<2x128xf32>
    %c0_178 = arith.constant 0 : index
    %c2_179 = arith.constant 2 : index
    %229 = memref.load %arg3[%c0_178, %c2_179] : memref<8x3xf32, #tpu.memory_space<smem>>
    %c1_180 = arith.constant 1 : index
    %c2_181 = arith.constant 2 : index
    %c0_182 = arith.constant 0 : index
    %c0_183 = arith.constant 0 : index
    %230 = vector.load %arg2[%c1_180, %c2_181, %c0_182, %c0_183] : memref<2x3x2x128xf32, #tpu.memory_space<vmem>>, vector<1x1x2x128xf32>
    %231 = vector.shape_cast %230 : vector<1x1x2x128xf32> to vector<2x128xf32>
    %232 = vector.broadcast %229 : f32 to vector<2x128xf32>
    %233 = arith.mulf %232, %231 : vector<2x128xf32>
    %234 = arith.addf %228, %233 : vector<2x128xf32>
    %c0_184 = arith.constant 0 : index
    %235 = memref.load %arg5[%c0_184] : memref<8xf32, #tpu.memory_space<smem>>
    %cst_185 = arith.constant 0.000000e+00 : f32
    %236 = vector.broadcast %cst_185 : f32 to vector<2x128xf32>
    %237 = arith.maximumf %234, %236 : vector<2x128xf32>
    %238 = vector.broadcast %235 : f32 to vector<2x128xf32>
    %239 = arith.mulf %238, %237 : vector<2x128xf32>
    %240 = arith.addf %214, %239 : vector<2x128xf32>
    %c1_186 = arith.constant 1 : index
    %241 = memref.load %arg4[%c1_186] : memref<8xf32, #tpu.memory_space<smem>>
    %242 = vector.broadcast %241 : f32 to vector<2x128xf32>
    %c1_187 = arith.constant 1 : index
    %c0_188 = arith.constant 0 : index
    %243 = memref.load %arg3[%c1_187, %c0_188] : memref<8x3xf32, #tpu.memory_space<smem>>
    %c1_189 = arith.constant 1 : index
    %c0_190 = arith.constant 0 : index
    %c0_191 = arith.constant 0 : index
    %c0_192 = arith.constant 0 : index
    %244 = vector.load %arg2[%c1_189, %c0_190, %c0_191, %c0_192] : memref<2x3x2x128xf32, #tpu.memory_space<vmem>>, vector<1x1x2x128xf32>
    %245 = vector.shape_cast %244 : vector<1x1x2x128xf32> to vector<2x128xf32>
    %246 = vector.broadcast %243 : f32 to vector<2x128xf32>
    %247 = arith.mulf %246, %245 : vector<2x128xf32>
    %248 = arith.addf %242, %247 : vector<2x128xf32>
    %c1_193 = arith.constant 1 : index
    %c1_194 = arith.constant 1 : index
    %249 = memref.load %arg3[%c1_193, %c1_194] : memref<8x3xf32, #tpu.memory_space<smem>>
    %c1_195 = arith.constant 1 : index
    %c1_196 = arith.constant 1 : index
    %c0_197 = arith.constant 0 : index
    %c0_198 = arith.constant 0 : index
    %250 = vector.load %arg2[%c1_195, %c1_196, %c0_197, %c0_198] : memref<2x3x2x128xf32, #tpu.memory_space<vmem>>, vector<1x1x2x128xf32>
    %251 = vector.shape_cast %250 : vector<1x1x2x128xf32> to vector<2x128xf32>
    %252 = vector.broadcast %249 : f32 to vector<2x128xf32>
    %253 = arith.mulf %252, %251 : vector<2x128xf32>
    %254 = arith.addf %248, %253 : vector<2x128xf32>
    %c1_199 = arith.constant 1 : index
    %c2_200 = arith.constant 2 : index
    %255 = memref.load %arg3[%c1_199, %c2_200] : memref<8x3xf32, #tpu.memory_space<smem>>
    %c1_201 = arith.constant 1 : index
    %c2_202 = arith.constant 2 : index
    %c0_203 = arith.constant 0 : index
    %c0_204 = arith.constant 0 : index
    %256 = vector.load %arg2[%c1_201, %c2_202, %c0_203, %c0_204] : memref<2x3x2x128xf32, #tpu.memory_space<vmem>>, vector<1x1x2x128xf32>
    %257 = vector.shape_cast %256 : vector<1x1x2x128xf32> to vector<2x128xf32>
    %258 = vector.broadcast %255 : f32 to vector<2x128xf32>
    %259 = arith.mulf %258, %257 : vector<2x128xf32>
    %260 = arith.addf %254, %259 : vector<2x128xf32>
    %c1_205 = arith.constant 1 : index
    %261 = memref.load %arg5[%c1_205] : memref<8xf32, #tpu.memory_space<smem>>
    %cst_206 = arith.constant 0.000000e+00 : f32
    %262 = vector.broadcast %cst_206 : f32 to vector<2x128xf32>
    %263 = arith.maximumf %260, %262 : vector<2x128xf32>
    %264 = vector.broadcast %261 : f32 to vector<2x128xf32>
    %265 = arith.mulf %264, %263 : vector<2x128xf32>
    %266 = arith.addf %240, %265 : vector<2x128xf32>
    %c2_207 = arith.constant 2 : index
    %267 = memref.load %arg4[%c2_207] : memref<8xf32, #tpu.memory_space<smem>>
    %268 = vector.broadcast %267 : f32 to vector<2x128xf32>
    %c2_208 = arith.constant 2 : index
    %c0_209 = arith.constant 0 : index
    %269 = memref.load %arg3[%c2_208, %c0_209] : memref<8x3xf32, #tpu.memory_space<smem>>
    %c1_210 = arith.constant 1 : index
    %c0_211 = arith.constant 0 : index
    %c0_212 = arith.constant 0 : index
    %c0_213 = arith.constant 0 : index
    %270 = vector.load %arg2[%c1_210, %c0_211, %c0_212, %c0_213] : memref<2x3x2x128xf32, #tpu.memory_space<vmem>>, vector<1x1x2x128xf32>
    %271 = vector.shape_cast %270 : vector<1x1x2x128xf32> to vector<2x128xf32>
    %272 = vector.broadcast %269 : f32 to vector<2x128xf32>
    %273 = arith.mulf %272, %271 : vector<2x128xf32>
    %274 = arith.addf %268, %273 : vector<2x128xf32>
    %c2_214 = arith.constant 2 : index
    %c1_215 = arith.constant 1 : index
    %275 = memref.load %arg3[%c2_214, %c1_215] : memref<8x3xf32, #tpu.memory_space<smem>>
    %c1_216 = arith.constant 1 : index
    %c1_217 = arith.constant 1 : index
    %c0_218 = arith.constant 0 : index
    %c0_219 = arith.constant 0 : index
    %276 = vector.load %arg2[%c1_216, %c1_217, %c0_218, %c0_219] : memref<2x3x2x128xf32, #tpu.memory_space<vmem>>, vector<1x1x2x128xf32>
    %277 = vector.shape_cast %276 : vector<1x1x2x128xf32> to vector<2x128xf32>
    %278 = vector.broadcast %275 : f32 to vector<2x128xf32>
    %279 = arith.mulf %278, %277 : vector<2x128xf32>
    %280 = arith.addf %274, %279 : vector<2x128xf32>
    %c2_220 = arith.constant 2 : index
    %c2_221 = arith.constant 2 : index
    %281 = memref.load %arg3[%c2_220, %c2_221] : memref<8x3xf32, #tpu.memory_space<smem>>
    %c1_222 = arith.constant 1 : index
    %c2_223 = arith.constant 2 : index
    %c0_224 = arith.constant 0 : index
    %c0_225 = arith.constant 0 : index
    %282 = vector.load %arg2[%c1_222, %c2_223, %c0_224, %c0_225] : memref<2x3x2x128xf32, #tpu.memory_space<vmem>>, vector<1x1x2x128xf32>
    %283 = vector.shape_cast %282 : vector<1x1x2x128xf32> to vector<2x128xf32>
    %284 = vector.broadcast %281 : f32 to vector<2x128xf32>
    %285 = arith.mulf %284, %283 : vector<2x128xf32>
    %286 = arith.addf %280, %285 : vector<2x128xf32>
    %c2_226 = arith.constant 2 : index
    %287 = memref.load %arg5[%c2_226] : memref<8xf32, #tpu.memory_space<smem>>
    %cst_227 = arith.constant 0.000000e+00 : f32
    %288 = vector.broadcast %cst_227 : f32 to vector<2x128xf32>
    %289 = arith.maximumf %286, %288 : vector<2x128xf32>
    %290 = vector.broadcast %287 : f32 to vector<2x128xf32>
    %291 = arith.mulf %290, %289 : vector<2x128xf32>
    %292 = arith.addf %266, %291 : vector<2x128xf32>
    %c3_228 = arith.constant 3 : index
    %293 = memref.load %arg4[%c3_228] : memref<8xf32, #tpu.memory_space<smem>>
    %294 = vector.broadcast %293 : f32 to vector<2x128xf32>
    %c3_229 = arith.constant 3 : index
    %c0_230 = arith.constant 0 : index
    %295 = memref.load %arg3[%c3_229, %c0_230] : memref<8x3xf32, #tpu.memory_space<smem>>
    %c1_231 = arith.constant 1 : index
    %c0_232 = arith.constant 0 : index
    %c0_233 = arith.constant 0 : index
    %c0_234 = arith.constant 0 : index
    %296 = vector.load %arg2[%c1_231, %c0_232, %c0_233, %c0_234] : memref<2x3x2x128xf32, #tpu.memory_space<vmem>>, vector<1x1x2x128xf32>
    %297 = vector.shape_cast %296 : vector<1x1x2x128xf32> to vector<2x128xf32>
    %298 = vector.broadcast %295 : f32 to vector<2x128xf32>
    %299 = arith.mulf %298, %297 : vector<2x128xf32>
    %300 = arith.addf %294, %299 : vector<2x128xf32>
    %c3_235 = arith.constant 3 : index
    %c1_236 = arith.constant 1 : index
    %301 = memref.load %arg3[%c3_235, %c1_236] : memref<8x3xf32, #tpu.memory_space<smem>>
    %c1_237 = arith.constant 1 : index
    %c1_238 = arith.constant 1 : index
    %c0_239 = arith.constant 0 : index
    %c0_240 = arith.constant 0 : index
    %302 = vector.load %arg2[%c1_237, %c1_238, %c0_239, %c0_240] : memref<2x3x2x128xf32, #tpu.memory_space<vmem>>, vector<1x1x2x128xf32>
    %303 = vector.shape_cast %302 : vector<1x1x2x128xf32> to vector<2x128xf32>
    %304 = vector.broadcast %301 : f32 to vector<2x128xf32>
    %305 = arith.mulf %304, %303 : vector<2x128xf32>
    %306 = arith.addf %300, %305 : vector<2x128xf32>
    %c3_241 = arith.constant 3 : index
    %c2_242 = arith.constant 2 : index
    %307 = memref.load %arg3[%c3_241, %c2_242] : memref<8x3xf32, #tpu.memory_space<smem>>
    %c1_243 = arith.constant 1 : index
    %c2_244 = arith.constant 2 : index
    %c0_245 = arith.constant 0 : index
    %c0_246 = arith.constant 0 : index
    %308 = vector.load %arg2[%c1_243, %c2_244, %c0_245, %c0_246] : memref<2x3x2x128xf32, #tpu.memory_space<vmem>>, vector<1x1x2x128xf32>
    %309 = vector.shape_cast %308 : vector<1x1x2x128xf32> to vector<2x128xf32>
    %310 = vector.broadcast %307 : f32 to vector<2x128xf32>
    %311 = arith.mulf %310, %309 : vector<2x128xf32>
    %312 = arith.addf %306, %311 : vector<2x128xf32>
    %c3_247 = arith.constant 3 : index
    %313 = memref.load %arg5[%c3_247] : memref<8xf32, #tpu.memory_space<smem>>
    %cst_248 = arith.constant 0.000000e+00 : f32
    %314 = vector.broadcast %cst_248 : f32 to vector<2x128xf32>
    %315 = arith.maximumf %312, %314 : vector<2x128xf32>
    %316 = vector.broadcast %313 : f32 to vector<2x128xf32>
    %317 = arith.mulf %316, %315 : vector<2x128xf32>
    %318 = arith.addf %292, %317 : vector<2x128xf32>
    %c4_249 = arith.constant 4 : index
    %319 = memref.load %arg4[%c4_249] : memref<8xf32, #tpu.memory_space<smem>>
    %320 = vector.broadcast %319 : f32 to vector<2x128xf32>
    %c4_250 = arith.constant 4 : index
    %c0_251 = arith.constant 0 : index
    %321 = memref.load %arg3[%c4_250, %c0_251] : memref<8x3xf32, #tpu.memory_space<smem>>
    %c1_252 = arith.constant 1 : index
    %c0_253 = arith.constant 0 : index
    %c0_254 = arith.constant 0 : index
    %c0_255 = arith.constant 0 : index
    %322 = vector.load %arg2[%c1_252, %c0_253, %c0_254, %c0_255] : memref<2x3x2x128xf32, #tpu.memory_space<vmem>>, vector<1x1x2x128xf32>
    %323 = vector.shape_cast %322 : vector<1x1x2x128xf32> to vector<2x128xf32>
    %324 = vector.broadcast %321 : f32 to vector<2x128xf32>
    %325 = arith.mulf %324, %323 : vector<2x128xf32>
    %326 = arith.addf %320, %325 : vector<2x128xf32>
    %c4_256 = arith.constant 4 : index
    %c1_257 = arith.constant 1 : index
    %327 = memref.load %arg3[%c4_256, %c1_257] : memref<8x3xf32, #tpu.memory_space<smem>>
    %c1_258 = arith.constant 1 : index
    %c1_259 = arith.constant 1 : index
    %c0_260 = arith.constant 0 : index
    %c0_261 = arith.constant 0 : index
    %328 = vector.load %arg2[%c1_258, %c1_259, %c0_260, %c0_261] : memref<2x3x2x128xf32, #tpu.memory_space<vmem>>, vector<1x1x2x128xf32>
    %329 = vector.shape_cast %328 : vector<1x1x2x128xf32> to vector<2x128xf32>
    %330 = vector.broadcast %327 : f32 to vector<2x128xf32>
    %331 = arith.mulf %330, %329 : vector<2x128xf32>
    %332 = arith.addf %326, %331 : vector<2x128xf32>
    %c4_262 = arith.constant 4 : index
    %c2_263 = arith.constant 2 : index
    %333 = memref.load %arg3[%c4_262, %c2_263] : memref<8x3xf32, #tpu.memory_space<smem>>
    %c1_264 = arith.constant 1 : index
    %c2_265 = arith.constant 2 : index
    %c0_266 = arith.constant 0 : index
    %c0_267 = arith.constant 0 : index
    %334 = vector.load %arg2[%c1_264, %c2_265, %c0_266, %c0_267] : memref<2x3x2x128xf32, #tpu.memory_space<vmem>>, vector<1x1x2x128xf32>
    %335 = vector.shape_cast %334 : vector<1x1x2x128xf32> to vector<2x128xf32>
    %336 = vector.broadcast %333 : f32 to vector<2x128xf32>
    %337 = arith.mulf %336, %335 : vector<2x128xf32>
    %338 = arith.addf %332, %337 : vector<2x128xf32>
    %c4_268 = arith.constant 4 : index
    %339 = memref.load %arg5[%c4_268] : memref<8xf32, #tpu.memory_space<smem>>
    %cst_269 = arith.constant 0.000000e+00 : f32
    %340 = vector.broadcast %cst_269 : f32 to vector<2x128xf32>
    %341 = arith.maximumf %338, %340 : vector<2x128xf32>
    %342 = vector.broadcast %339 : f32 to vector<2x128xf32>
    %343 = arith.mulf %342, %341 : vector<2x128xf32>
    %344 = arith.addf %318, %343 : vector<2x128xf32>
    %c5_270 = arith.constant 5 : index
    %345 = memref.load %arg4[%c5_270] : memref<8xf32, #tpu.memory_space<smem>>
    %346 = vector.broadcast %345 : f32 to vector<2x128xf32>
    %c5_271 = arith.constant 5 : index
    %c0_272 = arith.constant 0 : index
    %347 = memref.load %arg3[%c5_271, %c0_272] : memref<8x3xf32, #tpu.memory_space<smem>>
    %c1_273 = arith.constant 1 : index
    %c0_274 = arith.constant 0 : index
    %c0_275 = arith.constant 0 : index
    %c0_276 = arith.constant 0 : index
    %348 = vector.load %arg2[%c1_273, %c0_274, %c0_275, %c0_276] : memref<2x3x2x128xf32, #tpu.memory_space<vmem>>, vector<1x1x2x128xf32>
    %349 = vector.shape_cast %348 : vector<1x1x2x128xf32> to vector<2x128xf32>
    %350 = vector.broadcast %347 : f32 to vector<2x128xf32>
    %351 = arith.mulf %350, %349 : vector<2x128xf32>
    %352 = arith.addf %346, %351 : vector<2x128xf32>
    %c5_277 = arith.constant 5 : index
    %c1_278 = arith.constant 1 : index
    %353 = memref.load %arg3[%c5_277, %c1_278] : memref<8x3xf32, #tpu.memory_space<smem>>
    %c1_279 = arith.constant 1 : index
    %c1_280 = arith.constant 1 : index
    %c0_281 = arith.constant 0 : index
    %c0_282 = arith.constant 0 : index
    %354 = vector.load %arg2[%c1_279, %c1_280, %c0_281, %c0_282] : memref<2x3x2x128xf32, #tpu.memory_space<vmem>>, vector<1x1x2x128xf32>
    %355 = vector.shape_cast %354 : vector<1x1x2x128xf32> to vector<2x128xf32>
    %356 = vector.broadcast %353 : f32 to vector<2x128xf32>
    %357 = arith.mulf %356, %355 : vector<2x128xf32>
    %358 = arith.addf %352, %357 : vector<2x128xf32>
    %c5_283 = arith.constant 5 : index
    %c2_284 = arith.constant 2 : index
    %359 = memref.load %arg3[%c5_283, %c2_284] : memref<8x3xf32, #tpu.memory_space<smem>>
    %c1_285 = arith.constant 1 : index
    %c2_286 = arith.constant 2 : index
    %c0_287 = arith.constant 0 : index
    %c0_288 = arith.constant 0 : index
    %360 = vector.load %arg2[%c1_285, %c2_286, %c0_287, %c0_288] : memref<2x3x2x128xf32, #tpu.memory_space<vmem>>, vector<1x1x2x128xf32>
    %361 = vector.shape_cast %360 : vector<1x1x2x128xf32> to vector<2x128xf32>
    %362 = vector.broadcast %359 : f32 to vector<2x128xf32>
    %363 = arith.mulf %362, %361 : vector<2x128xf32>
    %364 = arith.addf %358, %363 : vector<2x128xf32>
    %c5_289 = arith.constant 5 : index
    %365 = memref.load %arg5[%c5_289] : memref<8xf32, #tpu.memory_space<smem>>
    %cst_290 = arith.constant 0.000000e+00 : f32
    %366 = vector.broadcast %cst_290 : f32 to vector<2x128xf32>
    %367 = arith.maximumf %364, %366 : vector<2x128xf32>
    %368 = vector.broadcast %365 : f32 to vector<2x128xf32>
    %369 = arith.mulf %368, %367 : vector<2x128xf32>
    %370 = arith.addf %344, %369 : vector<2x128xf32>
    %c6_291 = arith.constant 6 : index
    %371 = memref.load %arg4[%c6_291] : memref<8xf32, #tpu.memory_space<smem>>
    %372 = vector.broadcast %371 : f32 to vector<2x128xf32>
    %c6_292 = arith.constant 6 : index
    %c0_293 = arith.constant 0 : index
    %373 = memref.load %arg3[%c6_292, %c0_293] : memref<8x3xf32, #tpu.memory_space<smem>>
    %c1_294 = arith.constant 1 : index
    %c0_295 = arith.constant 0 : index
    %c0_296 = arith.constant 0 : index
    %c0_297 = arith.constant 0 : index
    %374 = vector.load %arg2[%c1_294, %c0_295, %c0_296, %c0_297] : memref<2x3x2x128xf32, #tpu.memory_space<vmem>>, vector<1x1x2x128xf32>
    %375 = vector.shape_cast %374 : vector<1x1x2x128xf32> to vector<2x128xf32>
    %376 = vector.broadcast %373 : f32 to vector<2x128xf32>
    %377 = arith.mulf %376, %375 : vector<2x128xf32>
    %378 = arith.addf %372, %377 : vector<2x128xf32>
    %c6_298 = arith.constant 6 : index
    %c1_299 = arith.constant 1 : index
    %379 = memref.load %arg3[%c6_298, %c1_299] : memref<8x3xf32, #tpu.memory_space<smem>>
    %c1_300 = arith.constant 1 : index
    %c1_301 = arith.constant 1 : index
    %c0_302 = arith.constant 0 : index
    %c0_303 = arith.constant 0 : index
    %380 = vector.load %arg2[%c1_300, %c1_301, %c0_302, %c0_303] : memref<2x3x2x128xf32, #tpu.memory_space<vmem>>, vector<1x1x2x128xf32>
    %381 = vector.shape_cast %380 : vector<1x1x2x128xf32> to vector<2x128xf32>
    %382 = vector.broadcast %379 : f32 to vector<2x128xf32>
    %383 = arith.mulf %382, %381 : vector<2x128xf32>
    %384 = arith.addf %378, %383 : vector<2x128xf32>
    %c6_304 = arith.constant 6 : index
    %c2_305 = arith.constant 2 : index
    %385 = memref.load %arg3[%c6_304, %c2_305] : memref<8x3xf32, #tpu.memory_space<smem>>
    %c1_306 = arith.constant 1 : index
    %c2_307 = arith.constant 2 : index
    %c0_308 = arith.constant 0 : index
    %c0_309 = arith.constant 0 : index
    %386 = vector.load %arg2[%c1_306, %c2_307, %c0_308, %c0_309] : memref<2x3x2x128xf32, #tpu.memory_space<vmem>>, vector<1x1x2x128xf32>
    %387 = vector.shape_cast %386 : vector<1x1x2x128xf32> to vector<2x128xf32>
    %388 = vector.broadcast %385 : f32 to vector<2x128xf32>
    %389 = arith.mulf %388, %387 : vector<2x128xf32>
    %390 = arith.addf %384, %389 : vector<2x128xf32>
    %c6_310 = arith.constant 6 : index
    %391 = memref.load %arg5[%c6_310] : memref<8xf32, #tpu.memory_space<smem>>
    %cst_311 = arith.constant 0.000000e+00 : f32
    %392 = vector.broadcast %cst_311 : f32 to vector<2x128xf32>
    %393 = arith.maximumf %390, %392 : vector<2x128xf32>
    %394 = vector.broadcast %391 : f32 to vector<2x128xf32>
    %395 = arith.mulf %394, %393 : vector<2x128xf32>
    %396 = arith.addf %370, %395 : vector<2x128xf32>
    %c7_312 = arith.constant 7 : index
    %397 = memref.load %arg4[%c7_312] : memref<8xf32, #tpu.memory_space<smem>>
    %398 = vector.broadcast %397 : f32 to vector<2x128xf32>
    %c7_313 = arith.constant 7 : index
    %c0_314 = arith.constant 0 : index
    %399 = memref.load %arg3[%c7_313, %c0_314] : memref<8x3xf32, #tpu.memory_space<smem>>
    %c1_315 = arith.constant 1 : index
    %c0_316 = arith.constant 0 : index
    %c0_317 = arith.constant 0 : index
    %c0_318 = arith.constant 0 : index
    %400 = vector.load %arg2[%c1_315, %c0_316, %c0_317, %c0_318] : memref<2x3x2x128xf32, #tpu.memory_space<vmem>>, vector<1x1x2x128xf32>
    %401 = vector.shape_cast %400 : vector<1x1x2x128xf32> to vector<2x128xf32>
    %402 = vector.broadcast %399 : f32 to vector<2x128xf32>
    %403 = arith.mulf %402, %401 : vector<2x128xf32>
    %404 = arith.addf %398, %403 : vector<2x128xf32>
    %c7_319 = arith.constant 7 : index
    %c1_320 = arith.constant 1 : index
    %405 = memref.load %arg3[%c7_319, %c1_320] : memref<8x3xf32, #tpu.memory_space<smem>>
    %c1_321 = arith.constant 1 : index
    %c1_322 = arith.constant 1 : index
    %c0_323 = arith.constant 0 : index
    %c0_324 = arith.constant 0 : index
    %406 = vector.load %arg2[%c1_321, %c1_322, %c0_323, %c0_324] : memref<2x3x2x128xf32, #tpu.memory_space<vmem>>, vector<1x1x2x128xf32>
    %407 = vector.shape_cast %406 : vector<1x1x2x128xf32> to vector<2x128xf32>
    %408 = vector.broadcast %405 : f32 to vector<2x128xf32>
    %409 = arith.mulf %408, %407 : vector<2x128xf32>
    %410 = arith.addf %404, %409 : vector<2x128xf32>
    %c7_325 = arith.constant 7 : index
    %c2_326 = arith.constant 2 : index
    %411 = memref.load %arg3[%c7_325, %c2_326] : memref<8x3xf32, #tpu.memory_space<smem>>
    %c1_327 = arith.constant 1 : index
    %c2_328 = arith.constant 2 : index
    %c0_329 = arith.constant 0 : index
    %c0_330 = arith.constant 0 : index
    %412 = vector.load %arg2[%c1_327, %c2_328, %c0_329, %c0_330] : memref<2x3x2x128xf32, #tpu.memory_space<vmem>>, vector<1x1x2x128xf32>
    %413 = vector.shape_cast %412 : vector<1x1x2x128xf32> to vector<2x128xf32>
    %414 = vector.broadcast %411 : f32 to vector<2x128xf32>
    %415 = arith.mulf %414, %413 : vector<2x128xf32>
    %416 = arith.addf %410, %415 : vector<2x128xf32>
    %c7_331 = arith.constant 7 : index
    %417 = memref.load %arg5[%c7_331] : memref<8xf32, #tpu.memory_space<smem>>
    %cst_332 = arith.constant 0.000000e+00 : f32
    %418 = vector.broadcast %cst_332 : f32 to vector<2x128xf32>
    %419 = arith.maximumf %416, %418 : vector<2x128xf32>
    %420 = vector.broadcast %417 : f32 to vector<2x128xf32>
    %421 = arith.mulf %420, %419 : vector<2x128xf32>
    %422 = arith.addf %396, %421 : vector<2x128xf32>
    %c1_333 = arith.constant 1 : index
    %c0_334 = arith.constant 0 : index
    %c0_335 = arith.constant 0 : index
    %c0_336 = arith.constant 0 : index
    %423 = vector.load %arg7[%c1_333, %c0_334, %c0_335, %c0_336] : memref<2x1x2x128xf32, #tpu.memory_space<vmem>>, vector<1x1x2x128xf32>
    %424 = vector.shape_cast %423 : vector<1x1x2x128xf32> to vector<2x128xf32>
    %425 = vector.shape_cast %422 : vector<2x128xf32> to vector<1x1x2x128xf32>
    tpu.vector_store %arg7[%c1_333, %c0_334, %c0_335, %c0_336], %425 {strides = array<i32>} : memref<2x1x2x128xf32, #tpu.memory_space<vmem>>, vector<1x1x2x128xf32>,
    return
  }
  func.func @transform_0(%arg0: i32, %arg1: i32) -> (i32, i32, i32, i32) {
    %c0_i32 = arith.constant 0 : i32
    %c0_i32_0 = arith.constant 0 : i32
    %c0_i32_1 = arith.constant 0 : i32
    return %arg0, %c0_i32, %arg1, %c0_i32_0 : i32, i32, i32, i32
  }
  func.func @transform_1(%arg0: i32, %arg1: i32) -> (i32, i32) {
    %c0_i32 = arith.constant 0 : i32
    %c0_i32_0 = arith.constant 0 : i32
    %c0_i32_1 = arith.constant 0 : i32
    return %c0_i32, %c0_i32_0 : i32, i32
  }
  func.func @transform_2(%arg0: i32, %arg1: i32) -> i32 {
    %c0_i32 = arith.constant 0 : i32
    %c0_i32_0 = arith.constant 0 : i32
    return %c0_i32 : i32
  }
  func.func @transform_3(%arg0: i32, %arg1: i32) -> i32 {
    %c0_i32 = arith.constant 0 : i32
    %c0_i32_0 = arith.constant 0 : i32
    return %c0_i32 : i32
  }
  func.func @transform_4(%arg0: i32, %arg1: i32) -> i32 {
    %c0_i32 = arith.constant 0 : i32
    %c0_i32_0 = arith.constant 0 : i32
    return %c0_i32 : i32
  }
  func.func @transform_5(%arg0: i32, %arg1: i32) -> (i32, i32, i32, i32) {
    %c0_i32 = arith.constant 0 : i32
    %c0_i32_0 = arith.constant 0 : i32
    %c0_i32_1 = arith.constant 0 : i32
    return %arg0, %c0_i32, %arg1, %c0_i32_0 : i32, i32, i32, i32
  }
}

</mosaic_0001>

<bundles_post_ra>
// kernel: tpu_custom_call.1
= control target key start
LH: loop header
LB: loop body
LE: loop exit
PB: predicated region body
PF: predicated region fallthrough
CT: control target
= control target key end

     0   :  { %s965_s0 = inlined_call_operand.vmem [shape: f32[2,3,2,128], index: 0, kind: input, shape index: {}]   ;;  %s966_s1 = inlined_call_operand.vmem [shape: f32[8,3], index: 1, kind: input, shape index: {}]   ;;  %s967_s2 = inlined_call_operand.vmem [shape: f32[8], index: 2, kind: input, shape index: {}]   ;;  %s968_s3 = inlined_call_operand.vmem [shape: f32[8], index: 3, kind: input, shape index: {}]   ;;  %s969_s4 = inlined_call_operand.<no memory space> [shape: f32[1], index: 4, kind: input, shape index: {}]   ;;  %s970_s5 = inlined_call_operand.hbm [shape: f32[2,1,2,128], index: 5, kind: output, shape index: {}]  }
   0x1   :  { %984 = sst [smem:[#allocation24_spill]] %s969_s4 }
   0x2   :  { %985 = sst [smem:[#allocation25_spill]] %s970_s5 }
   0x3   :  { %11 = vsyncpa [#allocation5], 0 }
   0x4   :  { %12 = vsyncpa [#allocation7], 0  ;;  %s32_s20 = sshll.u32 %s967_s2, 4  ;;  %s33_s20 = int_to_ptr.vmem [resolvable:$true] %s32_s20 }
   0x5   :  { %13 = vsyncpa [#allocation4], 0  ;;  %s22_s23 = sshll.u32 %s966_s1, 4  ;;  %s483_s24 = scalar_lea.vmem %s33_s20, 16  ;;  %s23_s23 = int_to_ptr.vmem [resolvable:$true] %s22_s23 }
   0x6   :  { %p484_p0 = scmp.ne.s32.totalorder %s33_s20, %s483_s24  ;;  %p488_p1 = scmp.lt.s32.totalorder %s33_s20, %s33_s20 }
   0x7   :  { %p489_p2 = scmp.lt.s32.totalorder %s483_s24, %s483_s24 }
   0x9   :  { %p490_p3 = por %p489_p2, %p488_p1 }
   0xb   :  { %p491_p4 = pnand %p490_p3, %p484_p0 }
   0xd   :  { %494 = shalt.err (!%p491_p4)
}
   0xe   :  { %s547_s25 = smov [#allocation6]   ;;  %s495_s26 = scalar_lea.vmem %s23_s23, 128 }
   0xf   :  { %35 = dma.vmem_to_smem %s33_s20, 16, %s547_s25, [#allocation7]  }
  0x10   :  { %p496_p5 = scmp.ne.s32.totalorder %s23_s23, %s495_s26  ;;  %p500_p6 = scmp.lt.s32.totalorder %s23_s23, %s23_s23 }
  0x11   :  { %p501_p7 = scmp.lt.s32.totalorder %s495_s26, %s495_s26 }
  0x13   :  { %p502_p8 = por %p501_p7, %p500_p6 }
  0x15   :  { %p503_p9 = pnand %p502_p8, %p496_p5 }
  0x17   :  { %506 = shalt.err (!%p503_p9)
}
  0x18   :  { %s548_s2 = smov [#allocation3]   ;;  %s42_s28 = sshll.u32 %s968_s3, 4  ;;  %s43_s28 = int_to_ptr.vmem [resolvable:$true] %s42_s28 }
  0x19   :  { %25 = dma.vmem_to_smem %s23_s23, 128, %s548_s2, [#allocation5]  }
  0x1a   :  { %s507_s29 = scalar_lea.vmem %s43_s28, 16  ;;  %p512_p11 = scmp.lt.s32.totalorder %s43_s28, %s43_s28 }
  0x1b   :  { %p508_p10 = scmp.ne.s32.totalorder %s43_s28, %s507_s29  ;;  %p513_p12 = scmp.lt.s32.totalorder %s507_s29, %s507_s29 }
  0x1d   :  { %p514_p13 = por %p513_p12, %p512_p11 }
  0x1f   :  { %p515_p0 = pnand %p514_p13, %p508_p10 }
  0x21   :  { %518 = shalt.err (!%p515_p0)
}
  0x22   :  { %s549_s30 = smov [#allocation8]  }
  0x23   :  { %45 = dma.vmem_to_smem %s43_s28, 16, %s549_s30, [#allocation7]  }
  0x24   :  { %541 = dma.done.wait [#allocation5], 128  }
  0x25   :  { %542 = vsyncadd [#allocation5], 4294967168 }
  0x26   :  { %543 = dma.done.wait [#allocation7], 32  }
  0x27   :  { %544 = vsyncadd [#allocation7], 4294967264 }
  0x28   :  { %57 = sfence }
  0x29   :  { %s592_s6 = sld [smem:[#allocation6]]  ;;  %s594_s3 = sld [smem:[#allocation3 + $0x1]]  ;;  %v601_v0 = vld [vmem:[%s965_s0] sm:$0x3]  ;;  %v610_v1 = vld [vmem:[%s965_s0 + $0x2] sm:$0x3]  ;;  %v59_v4 = vstv %s969_s4 }
  0x2a   :  { %s62_s7 = sld [smem:[#allocation3]]  ;;  %s596_s8 = sld [smem:[#allocation3 + $0x2]]  ;;  %v623_v2 = vld [vmem:[%s965_s0 + $0x6] sm:$0x3]  ;;  %v628_v3 = vld [vmem:[%s965_s0 + $0x4] sm:$0x3] }
  0x2b   :  { %s603_s11 = sld [smem:[#allocation8]]  ;;  %s605_s12 = sld [smem:[#allocation6 + $0x1]] }
  0x2c   :  { %s612_s15 = sld [smem:[#allocation3 + $0x80]]  ;;  %s614_s16 = sld [smem:[#allocation3 + $0x81]] }
  0x2d   :  { %s616_s17 = sld [smem:[#allocation3 + $0x82]]  ;;  %s618_s18 = sld [smem:[#allocation8 + $0x1]] }
  0x2e   :  { %s630_s23 = sld [smem:[#allocation6 + $0x2]]  ;;  %s632_s24 = sld [smem:[#allocation3 + $0x100]] }
  0x2f   :  { %v61_v5 = vstv %s592_s6  ;;  %s638_s2 = sld [smem:[#allocation3 + $0x101]]  ;;  %s640_s1 = sld [smem:[#allocation3 + $0x102]]  ;;  %v70_v8 = vstv %s594_s3 }
  0x30   :  { %v64_v6 = vstv %s62_s7  ;;  %v76_v9 = vstv %s596_s8  ;;  %s645_s27 = sld [smem:[#allocation8 + $0x2]]  ;;  %s647_s28 = sld [smem:[#allocation6 + $0x3]]  ;;  %v71_v11 = vmul.f32 %v610_v1, %v70_v8 }
  0x31   :  { %986 = sst [smem:[#allocation13_spill]] %s603_s11  ;;  %v65_v7 = vmul.f32 %v64_v6, %v601_v0  ;;  %v226_v10 = vmul.f32 %v623_v2, %v64_v6  ;;  %v77_v12 = vmul.f32 %v628_v3, %v76_v9  ;;  %v81_v13 = vstv %s603_s11  ;;  %s660_s30 = sld [smem:[#allocation3 + $0x181]] }
  0x32   :  { %v85_v14 = vstv %s605_s12  ;;  %s658_s29 = sld [smem:[#allocation3 + $0x180]]  ;;  %v87_v16 = vstv %s612_s15  ;;  %v91_v17 = vstv %s614_s16  ;;  %s664_s6 = sld [smem:[#allocation3 + $0x182]] }
  0x33   :  { %987 = sst [smem:[#allocation14_spill]] %s618_s18  ;;  %v66_v15 = vadd.f32 %v65_v7, %v61_v5  ;;  %s666_s7 = sld [smem:[#allocation8 + $0x3]]  ;;  %v668_v18 = vadd.f32 %v226_v10, %v61_v5  ;;  %v88_v19 = vmul.f32 %v87_v16, %v601_v0  ;;  %v92_v20 = vmul.f32 %v610_v1, %v91_v17 }
  0x34   :  { %988 = sst [smem:[#allocation15_spill]] %s630_s23  ;;  %v95_v21 = vstv %s616_s17  ;;  %v100_v22 = vstv %s618_s18  ;;  %s678_s9 = sld [smem:[#allocation6 + $0x4]]  ;;  %v104_v25 = vstv %s630_s23  ;;  %v106_v26 = vstv %s632_s24 }
  0x35   :  { %989 = sst [smem:[#allocation16_spill]] %s640_s1  ;;  %s680_s10 = sld [smem:[#allocation3 + $0x200]]  ;;  %v72_v23 = vadd.f32 %v71_v11, %v66_v15  ;;  %v96_v24 = vmul.f32 %v628_v3, %v95_v21  ;;  %v89_v27 = vadd.f32 %v88_v19, %v85_v14  ;;  %v107_v28 = vmul.f32 %v106_v26, %v601_v0 }
  0x36   :  { %990 = sst [smem:[#allocation17_spill]] %s647_s28  ;;  %s687_s13 = sld [smem:[#allocation3 + $0x201]]  ;;  %v110_v29 = vstv %s638_s2  ;;  %v114_v30 = vstv %s640_s1  ;;  %v119_v34 = vstv %s645_s27  ;;  %v123_v37 = vstv %s647_s28 }
  0x37   :  { %992 = sst [smem:[#allocation19_spill]] %s660_s30  ;;  %s696_s14 = sld [smem:[#allocation3 + $0x202]]  ;;  %v78_v31 = vadd.f32 %v77_v12, %v72_v23  ;;  %v111_v32 = vmul.f32 %v610_v1, %v110_v29  ;;  %v115_v33 = vmul.f32 %v628_v3, %v114_v30  ;;  %v93_v35 = vadd.f32 %v92_v20, %v89_v27 }
  0x38   :  { %991 = sst [smem:[#allocation18_spill]] %s658_s29  ;;  %s698_s19 = sld [smem:[#allocation8 + $0x4]]  ;;  %v108_v36 = vadd.f32 %v107_v28, %v104_v25  ;;  %v125_v38 = vstv %s658_s29  ;;  %v129_v41 = vstv %s660_s30  ;;  %v133_v42 = vstv %s664_s6 }
  0x39   :  { %993 = sst [smem:[#allocation20_spill]] %s664_s6  ;;  %s707_s20 = sld [smem:[#allocation6 + $0x5]]  ;;  %v80_v39 = vmax.f32 %v78_v31, 0.0  ;;  %v126_v40 = vmul.f32 %v125_v38, %v601_v0  ;;  %v97_v43 = vadd.f32 %v96_v24, %v93_v35  ;;  %v130_v45 = vmul.f32 %v610_v1, %v129_v41 }
  0x3a   :  { %994 = sst [smem:[#allocation21_spill]] %s666_s7  ;;  %s715_s22 = sld [smem:[#allocation3 + $0x281]]  ;;  %v112_v44 = vadd.f32 %v111_v32, %v108_v36  ;;  %v134_v46 = vmul.f32 %v628_v3, %v133_v42  ;;  %v138_v49 = vstv %s666_s7  ;;  %v142_v50 = vstv %s678_s9 }
  0x3b   :  { %s713_s21 = sld [smem:[#allocation3 + $0x280]]  ;;  %s722_s25 = sld [smem:[#allocation3 + $0x282]]  ;;  %v82_v47 = vmul.f32 %v81_v13, %v80_v39  ;;  %v127_v48 = vadd.f32 %v126_v40, %v123_v37  ;;  %v99_v51 = vmax.f32 %v97_v43, 0.0  ;;  %v144_v53 = vstv %s680_s10 }
  0x3c   :  { %s730_s26 = sld [smem:[#allocation8 + $0x5]]  ;;  %s732_s5 = sld [smem:[#allocation6 + $0x6]]  ;;  %v116_v52 = vadd.f32 %v115_v33, %v112_v44  ;;  %v148_v54 = vstv %s687_s13  ;;  %v145_v57 = vmul.f32 %v144_v53, %v601_v0 }
  0x3d   :  { %s740_s30 = sld [smem:[#allocation3 + $0x300]]  ;;  %s742_s6 = sld [smem:[#allocation3 + $0x301]]  ;;  %v83_v55 = vadd.f32 %v82_v47, %v59_v4  ;;  %v131_v56 = vadd.f32 %v130_v45, %v127_v48  ;;  %v149_v58 = vmul.f32 %v610_v1, %v148_v54  ;;  %v101_v59 = vmul.f32 %v100_v22, %v99_v51 }
  0x3e   :  { %s746_s11 = sld [smem:[#allocation3 + $0x302]]  ;;  %s748_s28 = sld [smem:[#allocation8 + $0x6]]  ;;  %v118_v60 = vmax.f32 %v116_v52, 0.0  ;;  %v152_v61 = vstv %s696_s14  ;;  %v157_v62 = vstv %s698_s19  ;;  %v146_v5 = vadd.f32 %v145_v57, %v142_v50  ;;  %v810_v52 = vld [vmem:[%s965_s0 + $0x8] sm:$0x3] }
  0x3f   :  { %995 = sst [smem:[#allocation22_spill]] %s707_s20  ;;  %s764_s23 = sld [smem:[#allocation6 + $0x7]]  ;;  %v135_v63 = vadd.f32 %v134_v46, %v131_v56  ;;  %v153_v6 = vmul.f32 %v628_v3, %v152_v61  ;;  %v161_v7 = vstv %s707_s20  ;;  %v102_v10 = vadd.f32 %v101_v59, %v83_v55 }
  0x40   :  { %s766_s1 = sld [smem:[#allocation3 + $0x380]]  ;;  %s774_s29 = sld [smem:[#allocation3 + $0x381]]  ;;  %v120_v11 = vmul.f32 %v119_v34, %v118_v60  ;;  %v167_v15 = vstv %s715_s22  ;;  %v150_v20 = vadd.f32 %v149_v58, %v146_v5 }
  0x41   :  { %v163_v12 = vstv %s713_s21  ;;  %s780_s4 = sld [smem:[#allocation3 + $0x382]]  ;;  %s782_s18 = sld [smem:[#allocation8 + $0x7]]  ;;  %v137_v19 = vmax.f32 %v135_v63, 0.0  ;;  %v168_v24 = vmul.f32 %v610_v1, %v167_v15  ;;  %v171_v28 = vstv %s722_s25 }
  0x42   :  { %996 = sst [smem:[#allocation23_spill]] %s730_s26  ;;  %v164_v23 = vmul.f32 %v163_v12, %v601_v0  ;;  %v121_v27 = vadd.f32 %v120_v11, %v102_v10  ;;  %v176_v31 = vstv %s730_s26  ;;  %v180_v32 = vstv %s732_s5  ;;  %s550_s5 = smov [#allocation9]  }
  0x43   :  { %v139_v33 = vmul.f32 %v138_v49, %v137_v19  ;;  %v154_v35 = vadd.f32 %v153_v6, %v150_v20  ;;  %v172_v39 = vmul.f32 %v628_v3, %v171_v28  ;;  %v182_v40 = vstv %s740_s30  ;;  %v830_v6 = vld [vmem:[%s965_s0 + $0xa] sm:$0x3] }
  0x44   :  { %v165_v36 = vadd.f32 %v164_v23, %v161_v7  ;;  %v186_v43 = vstv %s742_s6  ;;  %v190_v44 = vstv %s746_s11  ;;  %v195_v45 = vstv %s748_s28 }
  0x45   :  { %v140_v46 = vadd.f32 %v139_v33, %v121_v27  ;;  %v156_v47 = vmax.f32 %v154_v35, 0.0  ;;  %v183_v51 = vmul.f32 %v182_v40, %v601_v0  ;;  %v187_v55 = vmul.f32 %v610_v1, %v186_v43 }
  0x46   :  { %v169_v48 = vadd.f32 %v168_v24, %v165_v36  ;;  %v191_v56 = vmul.f32 %v628_v3, %v190_v44  ;;  %v199_v57 = vstv %s764_s23  ;;  %v201_v58 = vstv %s766_s1 }
  0x47   :  { %v158_v59 = vmul.f32 %v157_v62, %v156_v47  ;;  %v184_v63 = vadd.f32 %v183_v51, %v180_v32  ;;  %v202_v5 = vmul.f32 %v201_v58, %v601_v0  ;;  %v205_v10 = vstv %s774_s29 }
  0x48   :  { %v173_v60 = vadd.f32 %v172_v39, %v169_v48  ;;  %v209_v11 = vstv %s780_s4  ;;  %v214_v19 = vstv %s782_s18  ;;  %v232_v20 = vmul.f32 %v810_v52, %v70_v8  ;;  %s385_s4 = sshll.u32 %s550_s5, 4  ;;  %s386_s4 = int_to_ptr.vmem [resolvable:$true] %s385_s4 }
  0x49   :  { %v159_v23 = vadd.f32 %v158_v59, %v140_v46  ;;  %v188_v27 = vadd.f32 %v187_v55, %v184_v63  ;;  %v203_v0 = vadd.f32 %v202_v5, %v199_v57  ;;  %v206_v33 = vmul.f32 %v610_v1, %v205_v10  ;;  %s519_s11 = scalar_lea.vmem %s386_s4, 64  ;;  %p524_p2 = scmp.lt.s32.totalorder %s386_s4, %s386_s4 }
  0x4a   :  { %v175_v24 = vmax.f32 %v173_v60, 0.0  ;;  %v210_v35 = vmul.f32 %v628_v3, %v209_v11  ;;  %v233_v36 = vadd.f32 %v232_v20, %v668_v18  ;;  %v238_v8 = vmul.f32 %v830_v6, %v76_v9  ;;  %p520_p1 = scmp.ne.s32.totalorder %s386_s4, %s519_s11  ;;  %p525_p3 = scmp.lt.s32.totalorder %s519_s11, %s519_s11 }
  0x4b   :  { %v192_v46 = vadd.f32 %v191_v56, %v188_v27  ;;  %v249_v47 = vmul.f32 %v623_v2, %v87_v16  ;;  %v253_v1 = vmul.f32 %v810_v52, %v91_v17  ;;  %v207_v3 = vadd.f32 %v206_v33, %v203_v0 }
  0x4c   :  { %v177_v39 = vmul.f32 %v176_v31, %v175_v24  ;;  %v239_v48 = vadd.f32 %v238_v8, %v233_v36  ;;  %v257_v18 = vmul.f32 %v830_v6, %v95_v21  ;;  %v268_v9 = vmul.f32 %v623_v2, %v106_v26  ;;  %p526_p4 = por %p525_p3, %p524_p2 }
  0x4d   :  { %v194_v55 = vmax.f32 %v192_v46, 0.0  ;;  %v250_v56 = vadd.f32 %v249_v47, %v85_v14  ;;  %v272_v16 = vmul.f32 %v810_v52, %v110_v29  ;;  %v211_v17 = vadd.f32 %v210_v35, %v207_v3 }
  0x4e   :  { %v178_v51 = vadd.f32 %v177_v39, %v159_v23  ;;  %v241_v59 = vmax.f32 %v239_v48, 0.0  ;;  %v269_v60 = vadd.f32 %v268_v9, %v104_v25  ;;  %v276_v21 = vmul.f32 %v830_v6, %v114_v30  ;;  %p527_p5 = pnand %p526_p4, %p520_p1 }
  0x4f   :  { %v196_v26 = vmul.f32 %v195_v45, %v194_v55  ;;  %v254_v63 = vadd.f32 %v253_v1, %v250_v56  ;;  %v287_v14 = vmul.f32 %v623_v2, %v125_v38  ;;  %v291_v29 = vmul.f32 %v810_v52, %v129_v41 }
  0x50   :  { %v213_v5 = vmax.f32 %v211_v17, 0.0  ;;  %v243_v20 = vmul.f32 %v241_v59, %v81_v13  ;;  %v273_v23 = vadd.f32 %v272_v16, %v269_v60  ;;  %v295_v25 = vmul.f32 %v830_v6, %v133_v42 }
  0x51   :  { %v197_v30 = vadd.f32 %v196_v26, %v178_v51  ;;  %v258_v24 = vadd.f32 %v257_v18, %v254_v63  ;;  %v288_v27 = vadd.f32 %v287_v14, %v123_v37  ;;  %v306_v38 = vmul.f32 %v623_v2, %v144_v53 }
  0x52   :  { %v215_v41 = vmul.f32 %v214_v19, %v213_v5  ;;  %v244_v13 = vadd.f32 %v243_v20, %v59_v4  ;;  %v277_v0 = vadd.f32 %v276_v21, %v273_v23  ;;  %v310_v42 = vmul.f32 %v810_v52, %v148_v54 }
  0x53   :  { %v260_v33 = vmax.f32 %v258_v24, 0.0  ;;  %v292_v37 = vadd.f32 %v291_v29, %v288_v27  ;;  %v307_v53 = vadd.f32 %v306_v38, %v142_v50  ;;  %v314_v35 = vmul.f32 %v830_v6, %v152_v61 }
  0x54   :  { %v216_v36 = vadd.f32 %v215_v41, %v197_v30  ;;  %v279_v8 = vmax.f32 %v277_v0, 0.0  ;;  %v325_v4 = vmul.f32 %v623_v2, %v163_v12  ;;  %v329_v39 = vmul.f32 %v810_v52, %v167_v15 }
  0x55   :  { %v262_v54 = vmul.f32 %v260_v33, %v100_v22  ;;  %v296_v46 = vadd.f32 %v295_v25, %v292_v37  ;;  %v311_v47 = vadd.f32 %v310_v42, %v307_v53  ;;  %v333_v50 = vmul.f32 %v830_v6, %v171_v28 }
  0x56   :  { %217 = vst [vmem:[#allocation9] sm:$0x3] %v216_v36  ;;  %v281_v61 = vmul.f32 %v279_v8, %v119_v34  ;;  %v326_v1 = vadd.f32 %v325_v4, %v161_v7  ;;  %v344_v12 = vmul.f32 %v623_v2, %v182_v40  ;;  %v348_v22 = vmul.f32 %v810_v52, %v186_v43 }
  0x57   :  { %v263_v15 = vadd.f32 %v262_v54, %v244_v13  ;;  %v298_v3 = vmax.f32 %v296_v46, 0.0  ;;  %v315_v48 = vadd.f32 %v314_v35, %v311_v47  ;;  %v352_v28 = vmul.f32 %v830_v6, %v190_v44 }
  0x58   :  { %v330_v18 = vadd.f32 %v329_v39, %v326_v1  ;;  %v345_v34 = vadd.f32 %v344_v12, %v180_v32  ;;  %v363_v7 = vmul.f32 %v623_v2, %v201_v58  ;;  %v367_v40 = vmul.f32 %v810_v52, %v205_v10 }
  0x59   :  { %v282_v9 = vadd.f32 %v281_v61, %v263_v15  ;;  %v300_v43 = vmul.f32 %v298_v3, %v138_v49  ;;  %v317_v51 = vmax.f32 %v315_v48, 0.0  ;;  %v371_v44 = vmul.f32 %v830_v6, %v209_v11 }
  0x5a   :  { %v334_v55 = vadd.f32 %v333_v50, %v330_v18  ;;  %v349_v56 = vadd.f32 %v348_v22, %v345_v34  ;;  %v364_v16 = vadd.f32 %v363_v7, %v199_v57 }
  0x5b   :  { %v301_v32 = vadd.f32 %v300_v43, %v282_v9  ;;  %v319_v17 = vmul.f32 %v317_v51, %v157_v62 }
  0x5c   :  { %v336_v2 = vmax.f32 %v334_v55, 0.0  ;;  %v353_v58 = vadd.f32 %v352_v28, %v349_v56  ;;  %v368_v59 = vadd.f32 %v367_v40, %v364_v16 }
  0x5d   :  { %v320_v52 = vadd.f32 %v319_v17, %v301_v32 }
  0x5e   :  { %v338_v10 = vmul.f32 %v336_v2, %v176_v31  ;;  %v355_v49 = vmax.f32 %v353_v58, 0.0  ;;  %v372_v60 = vadd.f32 %v371_v44, %v368_v59 }
  0x60   :  { %v339_v21 = vadd.f32 %v338_v10, %v320_v52  ;;  %v357_v26 = vmul.f32 %v355_v49, %v195_v45  ;;  %v374_v63 = vmax.f32 %v372_v60, 0.0 }
  0x62   :  { %v358_v57 = vadd.f32 %v357_v26, %v339_v21  ;;  %v376_v6 = vmul.f32 %v374_v63, %v214_v19 }
  0x64   :  { %v377_v11 = vadd.f32 %v376_v6, %v358_v57 }
  0x66   :  { %379 = vst [vmem:[#allocation9 + $0x2] sm:$0x3] %v377_v11 }
  0x67   :  { %530 = shalt.err (!%p527_p5)
}
  0x68   :  { %s1009_s28 = sld [smem:[#allocation25_spill]] }
  0x6e   :  { %s531_s6 = scalar_lea.hbm %s1009_s28, 64 }
  0x6f   :  { %p532_p6 = scmp.ne.s32.totalorder %s1009_s28, %s531_s6  ;;  %p535_p7 = scmp.lt.u32.totalorder %s531_s6, %s1009_s28 }
  0x71   :  { %p537_p8 = pnand %p535_p7, %p532_p6 }
  0x73   :  { %540 = shalt.err (!%p537_p8)
}
  0x74   :  { %s551_s19 = smov 32   ;;  %s552_s21 = smov 2  }
  0x75   :  { %391 = dma.vmem_to_hbm [thread:$0]  %s386_s4, 64, %s1009_s28, [#allocation4], %s551_s19, %s551_s19, %s552_s21  }
  0x76   :  { %545 = dma.done.wait [#allocation4], 64  }
  0x77   :  { %546 = vsyncadd [#allocation4], 4294967232 }
  0x78   :  { %395 = vsyncpa [#allocation4], 1 }
  0x79   :  { %396 = vsyncpa [#allocation5], 1 }
  0x7a   :  { %397 = vsyncpa [#allocation7], 1 }

</bundles_post_ra>
